<compile_context>
chip_gen: v7x
topology: tpu7x:2x2x1
jax: 0.10.0
libtpu: 0.0.40
codegen_flags: <defaults>
</compile_context>

<pallas_src>
import functools

import jax
import jax.numpy as jnp
from jax import lax
from jax.experimental import pallas as pl
from jax.experimental.pallas import tpu as pltpu


def _focal_loss_kernel(preds_ref, target_ref, alpha_t_ref, out_ref,
                       wnll_acc, asum_acc, fsum_acc,
                       *, gamma, batch, row_tile, reduction):
    pid = pl.program_id(0)

    @pl.when(pid == 0)
    def _init():
        wnll_acc[...] = jnp.zeros_like(wnll_acc)
        asum_acc[...] = jnp.zeros_like(asum_acc)
        fsum_acc[...] = jnp.zeros_like(fsum_acc)

    x = preds_ref[...].astype(jnp.float32)            # (TB, C)
    t = target_ref[...]                               # (TB, 1) int32
    a_t = alpha_t_ref[...].astype(jnp.float32)        # (TB, 1)
    TB, C = x.shape

    # Mask for padded rows of the (possibly partial) last tile.
    row = lax.broadcasted_iota(jnp.int32, (TB, 1), 0) + pid * row_tile
    valid = row < batch                                # (TB, 1) bool
    x = jnp.where(valid, x, 0.0)                       # keep exp/log finite
    a_t = jnp.where(valid, a_t, 0.0)

    # log_softmax along the class (lane) axis.
    m = jnp.max(x, axis=-1, keepdims=True)
    lse = m + jnp.log(jnp.sum(jnp.exp(x - m), axis=-1, keepdims=True))
    log_p = x - lse                                    # (TB, C)

    # gather log_p[i, target_i] via one-hot mask.
    col = lax.broadcasted_iota(jnp.int32, (TB, C), 1)
    onehot = (col == t).astype(jnp.float32)            # (TB, C)
    log_pt = jnp.sum(log_p * onehot, axis=-1, keepdims=True)   # (TB, 1)

    # focal term, specialized at trace time on the static gamma.
    pt = jnp.exp(log_pt)
    g = float(gamma)
    if g == 0.0:
        focal = jnp.ones_like(pt)
    elif g.is_integer() and 0 < int(g) <= 8:
        base = 1.0 - pt
        focal = base
        for _ in range(int(g) - 1):
            focal = focal * base
    else:
        focal = jnp.power(1.0 - pt, jnp.float32(g))
    focal = jnp.where(valid, focal, 0.0)

    # Per-tile partial sums accumulated into (1,1) VMEM scratch.
    wnll_acc[...] += jnp.sum(a_t * (-log_pt), axis=(0, 1), keepdims=True)
    asum_acc[...] += jnp.sum(a_t, axis=(0, 1), keepdims=True)
    fsum_acc[...] += jnp.sum(focal, axis=(0, 1), keepdims=True)

    @pl.when(pid == pl.num_programs(0) - 1)
    def _finalize():
        nll = wnll_acc[...] / asum_acc[...]            # (1, 1)
        if reduction == "mean":
            out_ref[...] = (fsum_acc[...] / jnp.float32(batch)) * nll
        else:  # "sum"
            out_ref[...] = fsum_acc[...] * nll


def _pick_row_tile(batch, num_classes, itemsize):
    # Aim: double-buffered preds tiles within ~16 MiB, rows in [8, 1024].
    budget = 16 << 20
    max_rows = max(8, budget // max(1, 2 * num_classes * itemsize))
    tb = min(batch, 1024, max_rows)
    if tb >= batch:
        return batch                  # full dim is always a legal block shape
    return max(8, (tb // 8) * 8)      # sublane-aligned


def focal_loss_pallas(preds, target, alpha, gamma: float = 0.0,
                      reduction: str = "mean", row_tile: int | None = None):
    """preds: (B, C) float, target: (B,) int, alpha: (C,) float -> scalar."""
    if reduction not in ("mean", "sum"):
        raise ValueError("Only 'mean' and 'sum' reductions are supported.")
    B, C = preds.shape
    itemsize = jnp.dtype(preds.dtype).itemsize

    tb = row_tile if row_tile is not None else _pick_row_tile(B, C, itemsize)
    num_tiles = pl.cdiv(B, tb)

    target_2d = target.astype(jnp.int32).reshape(B, 1)
    # Precompute alpha_t = alpha[target] outside the kernel (tiny gather).
    alpha_t_2d = alpha.astype(jnp.float32)[target.astype(jnp.int32)].reshape(B, 1)

    # VMEM budget: double-buffered preds/target/alpha_t tiles + scratch.
    est = 2 * (tb * C * itemsize) + 4 * (tb * 4) + (256 << 10)
    vmem_limit = int(min(max(2 * est, 32 << 20), 48 << 20))

    kernel = functools.partial(
        _focal_loss_kernel,
        gamma=float(gamma), batch=B, row_tile=tb, reduction=reduction)

    out = pl.pallas_call(
        kernel,
        out_shape=jax.ShapeDtypeStruct((1, 1), jnp.float32),
        grid_spec=pltpu.PrefetchScalarGridSpec(
            num_scalar_prefetch=0,
            grid=(num_tiles,),
            in_specs=[
                pl.BlockSpec((tb, C), lambda i: (i, 0)),   # preds (native dtype)
                pl.BlockSpec((tb, 1), lambda i: (i, 0)),   # target
                pl.BlockSpec((tb, 1), lambda i: (i, 0)),   # alpha_t
            ],
            out_specs=pl.BlockSpec((1, 1), lambda i: (0, 0)),
            scratch_shapes=[
                pltpu.VMEM((1, 1), jnp.float32),   # sum alpha_t * (-log_pt)
                pltpu.VMEM((1, 1), jnp.float32),   # sum alpha_t
                pltpu.VMEM((1, 1), jnp.float32),   # sum focal
            ],
        ),
        compiler_params=pltpu.CompilerParams(
            dimension_semantics=("arbitrary",),
            vmem_limit_bytes=vmem_limit,
        ),
    )(preds, target_2d, alpha_t_2d)
    return out[0, 0]


def focal_loss_ref(preds, target, alpha, gamma, reduction="mean"):
    # Pure-JAX reference mirroring the PyTorch code exactly.
    log_p = jax.nn.log_softmax(preds.astype(jnp.float32), axis=-1)
    B = preds.shape[0]
    log_pt = log_p[jnp.arange(B), target]
    alpha_t = alpha[target]
    nll = jnp.sum(alpha_t * (-log_pt)) / jnp.sum(alpha_t)
    pt = jnp.exp(log_pt)
    focal = (1.0 - pt) ** gamma
    loss = focal * nll
    return jnp.mean(loss) if reduction == "mean" else jnp.sum(loss)


if __name__ == "__main__":
    key = jax.random.PRNGKey(0)

    # --- small single-tile case (matches the module's (batch, C) layout) ---
    B, C = 8, 16
    gamma = 2.0
    k1, k2 = jax.random.split(key)
    preds = jax.random.normal(k1, (B, C), dtype=jnp.float32)
    target = jax.random.randint(k2, (B,), 0, C, dtype=jnp.int32)
    alpha = jnp.linspace(0.5, 1.5, C, dtype=jnp.float32)

    loss = focal_loss_pallas(preds, target, alpha, gamma=gamma)
    loss = jax.block_until_ready(loss)
    ref = focal_loss_ref(preds, target, alpha, gamma)
    assert jnp.allclose(loss, ref, rtol=1e-5, atol=1e-5), (loss, ref)

    # --- multi-tile case with a partial last tile (exercises mask + accum) ---
    B2 = 20
    k3, k4 = jax.random.split(k2)
    preds2 = jax.random.normal(k3, (B2, C), dtype=jnp.float32)
    target2 = jax.random.randint(k4, (B2,), 0, C, dtype=jnp.int32)

    loss2 = focal_loss_pallas(preds2, target2, alpha, gamma=gamma, row_tile=8)
    loss2 = jax.block_until_ready(loss2)
    ref2 = focal_loss_ref(preds2, target2, alpha, gamma)
    assert jnp.allclose(loss2, ref2, rtol=1e-5, atol=1e-5), (loss2, ref2)

    print("KERNEL_OK")
</pallas_src>

<mosaic_0001>
module attributes {stable_mosaic.version = 11 : i64} {
  func.func @_focal_loss_kernel(%arg0: i32, %arg1: memref<8x16xf32, #tpu.memory_space<vmem>>, %arg2: memref<8x1xi32, #tpu.memory_space<vmem>>, %arg3: memref<8x1xf32, #tpu.memory_space<vmem>>, %arg4: memref<1x1xf32, #tpu.memory_space<vmem>>, %arg5: memref<1x1xf32, #tpu.memory_space<vmem>>, %arg6: memref<1x1xf32, #tpu.memory_space<vmem>>, %arg7: memref<1x1xf32, #tpu.memory_space<vmem>>) attributes {dimension_semantics = [#tpu.dimension_semantics<arbitrary>], iteration_bounds = array<i64: 1>, scalar_prefetch = 0 : i64, scratch_operands = 3 : i64, tpu.core_type = #tpu.core_type<tc>, window_params = [{transform_indices = @transform_0, window_bounds = array<i64: 8, 16>}, {transform_indices = @transform_1, window_bounds = array<i64: 8, 1>}, {transform_indices = @transform_2, window_bounds = array<i64: 8, 1>}, {pipeline_mode = #tpu.pipeline_mode<synchronous>, transform_indices = @transform_3, window_bounds = array<i64: 1, 1>}]} {
    %c0_i32 = arith.constant 0 : i32
    %0 = arith.cmpi eq, %arg0, %c0_i32 : i32
    %1 = arith.extui %0 : i1 to i32
    %c0_i32_0 = arith.constant 0 : i32
    %2 = arith.cmpi ne, %1, %c0_i32_0 : i32
    scf.if %2 {
      %cst_31 = arith.constant 0.000000e+00 : f32
      %73 = vector.broadcast %cst_31 : f32 to vector<1x1xf32>
      %c0_32 = arith.constant 0 : index
      %c0_33 = arith.constant 0 : index
      %74 = vector.load %arg5[%c0_32, %c0_33] : memref<1x1xf32, #tpu.memory_space<vmem>>, vector<1x1xf32>
      tpu.vector_store %arg5[%c0_32, %c0_33], %73 {strides = array<i32>} : memref<1x1xf32, #tpu.memory_space<vmem>>, vector<1x1xf32>,
      %cst_34 = arith.constant 0.000000e+00 : f32
      %75 = vector.broadcast %cst_34 : f32 to vector<1x1xf32>
      %c0_35 = arith.constant 0 : index
      %c0_36 = arith.constant 0 : index
      %76 = vector.load %arg6[%c0_35, %c0_36] : memref<1x1xf32, #tpu.memory_space<vmem>>, vector<1x1xf32>
      tpu.vector_store %arg6[%c0_35, %c0_36], %75 {strides = array<i32>} : memref<1x1xf32, #tpu.memory_space<vmem>>, vector<1x1xf32>,
      %cst_37 = arith.constant 0.000000e+00 : f32
      %77 = vector.broadcast %cst_37 : f32 to vector<1x1xf32>
      %c0_38 = arith.constant 0 : index
      %c0_39 = arith.constant 0 : index
      %78 = vector.load %arg7[%c0_38, %c0_39] : memref<1x1xf32, #tpu.memory_space<vmem>>, vector<1x1xf32>
      tpu.vector_store %arg7[%c0_38, %c0_39], %77 {strides = array<i32>} : memref<1x1xf32, #tpu.memory_space<vmem>>, vector<1x1xf32>,
    } else {
    }
    %c0 = arith.constant 0 : index
    %c0_1 = arith.constant 0 : index
    %3 = vector.load %arg1[%c0, %c0_1] : memref<8x16xf32, #tpu.memory_space<vmem>>, vector<8x16xf32>
    %c0_2 = arith.constant 0 : index
    %c0_3 = arith.constant 0 : index
    %4 = vector.load %arg2[%c0_2, %c0_3] : memref<8x1xi32, #tpu.memory_space<vmem>>, vector<8x1xi32>
    %c0_4 = arith.constant 0 : index
    %c0_5 = arith.constant 0 : index
    %5 = vector.load %arg3[%c0_4, %c0_5] : memref<8x1xf32, #tpu.memory_space<vmem>>, vector<8x1xf32>
    %6 = tpu.iota {dimensions = array<i32: 0>} : vector<8x1xi32>
    %c8_i32 = arith.constant 8 : i32
    %7 = arith.muli %arg0, %c8_i32 : i32
    %8 = vector.broadcast %7 : i32 to vector<8x1xi32>
    %9 = arith.addi %6, %8 : vector<8x1xi32>
    %c8_i32_6 = arith.constant 8 : i32
    %10 = vector.broadcast %c8_i32_6 : i32 to vector<8x1xi32>
    %11 = arith.cmpi slt, %9, %10 : vector<8x1xi32>
    %cst = arith.constant 0.000000e+00 : f32
    %12 = vector.shape_cast %11 : vector<8x1xi1> to vector<8x1xi1>
    %13 = vector.broadcast %12 : vector<8x1xi1> to vector<8x16xi1>
    %14 = vector.broadcast %cst : f32 to vector<8x16xf32>
    %15 = arith.select %13, %3, %14 : vector<8x16xi1>, vector<8x16xf32>
    %cst_7 = arith.constant 0.000000e+00 : f32
    %16 = vector.broadcast %cst_7 : f32 to vector<8x1xf32>
    %17 = arith.select %11, %5, %16 : vector<8x1xi1>, vector<8x1xf32>
    %cst_8 = arith.constant dense<0xFF800000> : vector<8xf32>
    %18 = vector.multi_reduction <maximumf>, %15, %cst_8 [1] : vector<8x16xf32> to vector<8xf32>
    %19 = vector.shape_cast %18 : vector<8xf32> to vector<8x1xf32>
    %20 = vector.broadcast %19 : vector<8x1xf32> to vector<8x16xf32>
    %21 = arith.subf %15, %20 : vector<8x16xf32>
    %22 = math.exp %21 : vector<8x16xf32>
    %cst_9 = arith.constant dense<0.000000e+00> : vector<8xf32>
    %23 = vector.multi_reduction <add>, %22, %cst_9 [1] : vector<8x16xf32> to vector<8xf32>
    %24 = vector.shape_cast %23 : vector<8xf32> to vector<8x1xf32>
    %25 = math.log %24 : vector<8x1xf32>
    %26 = arith.addf %19, %25 : vector<8x1xf32>
    %27 = vector.broadcast %26 : vector<8x1xf32> to vector<8x16xf32>
    %28 = arith.subf %15, %27 : vector<8x16xf32>
    %29 = tpu.iota {dimensions = array<i32: 1>} : vector<8x16xi32>
    %30 = vector.broadcast %4 : vector<8x1xi32> to vector<8x16xi32>
    %31 = arith.cmpi eq, %29, %30 : vector<8x16xi32>
    %32 = arith.extui %31 : vector<8x16xi1> to vector<8x16xi32>
    %33 = arith.sitofp %32 : vector<8x16xi32> to vector<8x16xf32>
    %34 = arith.mulf %28, %33 : vector<8x16xf32>
    %cst_10 = arith.constant dense<0.000000e+00> : vector<8xf32>
    %35 = vector.multi_reduction <add>, %34, %cst_10 [1] : vector<8x16xf32> to vector<8xf32>
    %36 = vector.shape_cast %35 : vector<8xf32> to vector<8x1xf32>
    %37 = math.exp %36 : vector<8x1xf32>
    %cst_11 = arith.constant 1.000000e+00 : f32
    %38 = vector.broadcast %cst_11 : f32 to vector<8x1xf32>
    %39 = arith.subf %38, %37 : vector<8x1xf32>
    %40 = arith.mulf %39, %39 : vector<8x1xf32>
    %cst_12 = arith.constant 0.000000e+00 : f32
    %41 = vector.broadcast %cst_12 : f32 to vector<8x1xf32>
    %42 = arith.select %11, %40, %41 : vector<8x1xi1>, vector<8x1xf32>
    %c0_13 = arith.constant 0 : index
    %c0_14 = arith.constant 0 : index
    %43 = vector.load %arg5[%c0_13, %c0_14] : memref<1x1xf32, #tpu.memory_space<vmem>>, vector<1x1xf32>
    %cst_15 = arith.constant 0.000000e+00 : f32
    %44 = vector.broadcast %cst_15 : f32 to vector<8x1xf32>
    %45 = arith.subf %44, %36 : vector<8x1xf32>
    %46 = arith.mulf %17, %45 : vector<8x1xf32>
    %47 = vector.shape_cast %46 : vector<8x1xf32> to vector<1x8x1xf32>
    %cst_16 = arith.constant dense<0.000000e+00> : vector<1xf32>
    %48 = vector.multi_reduction <add>, %47, %cst_16 [1, 2] : vector<1x8x1xf32> to vector<1xf32>
    %49 = vector.shape_cast %48 : vector<1xf32> to vector<1x1x1xf32>
    %50 = vector.extract %49[0, 0, 0] : f32 from vector<1x1x1xf32>
    %51 = vector.broadcast %50 : f32 to vector<1x1xf32>
    %52 = arith.addf %43, %51 : vector<1x1xf32>
    %c0_17 = arith.constant 0 : index
    %c0_18 = arith.constant 0 : index
    %53 = vector.load %arg5[%c0_17, %c0_18] : memref<1x1xf32, #tpu.memory_space<vmem>>, vector<1x1xf32>
    tpu.vector_store %arg5[%c0_17, %c0_18], %52 {strides = array<i32>} : memref<1x1xf32, #tpu.memory_space<vmem>>, vector<1x1xf32>,
    %c0_19 = arith.constant 0 : index
    %c0_20 = arith.constant 0 : index
    %54 = vector.load %arg6[%c0_19, %c0_20] : memref<1x1xf32, #tpu.memory_space<vmem>>, vector<1x1xf32>
    %55 = vector.shape_cast %17 : vector<8x1xf32> to vector<1x8x1xf32>
    %cst_21 = arith.constant dense<0.000000e+00> : vector<1xf32>
    %56 = vector.multi_reduction <add>, %55, %cst_21 [1, 2] : vector<1x8x1xf32> to vector<1xf32>
    %57 = vector.shape_cast %56 : vector<1xf32> to vector<1x1x1xf32>
    %58 = vector.extract %57[0, 0, 0] : f32 from vector<1x1x1xf32>
    %59 = vector.broadcast %58 : f32 to vector<1x1xf32>
    %60 = arith.addf %54, %59 : vector<1x1xf32>
    %c0_22 = arith.constant 0 : index
    %c0_23 = arith.constant 0 : index
    %61 = vector.load %arg6[%c0_22, %c0_23] : memref<1x1xf32, #tpu.memory_space<vmem>>, vector<1x1xf32>
    tpu.vector_store %arg6[%c0_22, %c0_23], %60 {strides = array<i32>} : memref<1x1xf32, #tpu.memory_space<vmem>>, vector<1x1xf32>,
    %c0_24 = arith.constant 0 : index
    %c0_25 = arith.constant 0 : index
    %62 = vector.load %arg7[%c0_24, %c0_25] : memref<1x1xf32, #tpu.memory_space<vmem>>, vector<1x1xf32>
    %63 = vector.shape_cast %42 : vector<8x1xf32> to vector<1x8x1xf32>
    %cst_26 = arith.constant dense<0.000000e+00> : vector<1xf32>
    %64 = vector.multi_reduction <add>, %63, %cst_26 [1, 2] : vector<1x8x1xf32> to vector<1xf32>
    %65 = vector.shape_cast %64 : vector<1xf32> to vector<1x1x1xf32>
    %66 = vector.extract %65[0, 0, 0] : f32 from vector<1x1x1xf32>
    %67 = vector.broadcast %66 : f32 to vector<1x1xf32>
    %68 = arith.addf %62, %67 : vector<1x1xf32>
    %c0_27 = arith.constant 0 : index
    %c0_28 = arith.constant 0 : index
    %69 = vector.load %arg7[%c0_27, %c0_28] : memref<1x1xf32, #tpu.memory_space<vmem>>, vector<1x1xf32>
    tpu.vector_store %arg7[%c0_27, %c0_28], %68 {strides = array<i32>} : memref<1x1xf32, #tpu.memory_space<vmem>>, vector<1x1xf32>,
    %c0_i32_29 = arith.constant 0 : i32
    %70 = arith.cmpi eq, %arg0, %c0_i32_29 : i32
    %71 = arith.extui %70 : i1 to i32
    %c0_i32_30 = arith.constant 0 : i32
    %72 = arith.cmpi ne, %71, %c0_i32_30 : i32
    scf.if %72 {
      %c0_31 = arith.constant 0 : index
      %c0_32 = arith.constant 0 : index
      %73 = vector.load %arg5[%c0_31, %c0_32] : memref<1x1xf32, #tpu.memory_space<vmem>>, vector<1x1xf32>
      %c0_33 = arith.constant 0 : index
      %c0_34 = arith.constant 0 : index
      %74 = vector.load %arg6[%c0_33, %c0_34] : memref<1x1xf32, #tpu.memory_space<vmem>>, vector<1x1xf32>
      %75 = arith.divf %73, %74 : vector<1x1xf32>
      %c0_35 = arith.constant 0 : index
      %c0_36 = arith.constant 0 : index
      %76 = vector.load %arg7[%c0_35, %c0_36] : memref<1x1xf32, #tpu.memory_space<vmem>>, vector<1x1xf32>
      %cst_37 = arith.constant 8.000000e+00 : f32
      %77 = vector.broadcast %cst_37 : f32 to vector<1x1xf32>
      %78 = arith.divf %76, %77 : vector<1x1xf32>
      %79 = arith.mulf %78, %75 : vector<1x1xf32>
      %c0_38 = arith.constant 0 : index
      %c0_39 = arith.constant 0 : index
      %80 = vector.load %arg4[%c0_38, %c0_39] : memref<1x1xf32, #tpu.memory_space<vmem>>, vector<1x1xf32>
      tpu.vector_store %arg4[%c0_38, %c0_39], %79 {strides = array<i32>} : memref<1x1xf32, #tpu.memory_space<vmem>>, vector<1x1xf32>,
    } else {
    }
    return
  }
  func.func @transform_0(%arg0: i32) -> (i32, i32) {
    %c0_i32 = arith.constant 0 : i32
    %c0_i32_0 = arith.constant 0 : i32
    return %arg0, %c0_i32 : i32, i32
  }
  func.func @transform_1(%arg0: i32) -> (i32, i32) {
    %c0_i32 = arith.constant 0 : i32
    %c0_i32_0 = arith.constant 0 : i32
    return %arg0, %c0_i32 : i32, i32
  }
  func.func @transform_2(%arg0: i32) -> (i32, i32) {
    %c0_i32 = arith.constant 0 : i32
    %c0_i32_0 = arith.constant 0 : i32
    return %arg0, %c0_i32 : i32, i32
  }
  func.func @transform_3(%arg0: i32) -> (i32, i32) {
    %c0_i32 = arith.constant 0 : i32
    %c0_i32_0 = arith.constant 0 : i32
    %c0_i32_1 = arith.constant 0 : i32
    return %c0_i32, %c0_i32_0 : i32, i32
  }
}

</mosaic_0001>

<bundles_post_ra>
// kernel: tpu_custom_call.1
= control target key start
LH: loop header
LB: loop body
LE: loop exit
PB: predicated region body
PF: predicated region fallthrough
CT: control target
= control target key end

     0   :  { %vm36_vm0 = vcmask 130048   ;;  %s237_s0 = inlined_call_operand.vmem [shape: f32[8,16], index: 0, kind: input, shape index: {}]   ;;  %s238_s1 = inlined_call_operand.vmem [shape: s32[8,1], index: 1, kind: input, shape index: {}]   ;;  %s239_s2 = inlined_call_operand.vmem [shape: f32[8,1], index: 2, kind: input, shape index: {}]   ;;  %s240_s3 = inlined_call_operand.hbm [shape: f32[1,1], index: 3, kind: output, shape index: {}]  }
   0x1   :  { %v23_v0 = vld [vmem:[%s237_s0] sm:$0xff] }
   0x2   :  { %8 = vsyncpa [#allocation6], 0  ;;  %v37_v1 = vsel %vm36_vm0, %v23_v0, -inf  ;;  %v24_v2 = vld [vmem:[%s238_s1] sm:$0xff]  ;;  %v183_v3 = vmov 0   ;;  %vm19_vm1 = vcmask 0   ;;  %v50_v11 = vlaneseq }
   0x3   :  { %38 = vmax.xlane.f32.xlu0 %v37_v1  ;;  %149 = vset.pattern.permute.xlu1 %v183_v3  ;;  %v184_v9 = vmov 0.0   ;;  %v25_v22 = vld [vmem:[%s239_s2] sm:$0xff]  ;;  %vm70_vm3 = vcmask 7168   ;;  %s185_s18 = smov [#allocation5]  }
   0x4   :  { %150 = vset.pattern.permute.xlu0 %v183_v3  ;;  %53 = vperm.xlu1 %149, %v24_v2   ;;  %20 = vst.msk [vmem:[#allocation2] sm:$0x1] %vm19_vm1, %v184_v9  ;;  %21 = vst.msk [vmem:[#allocation3] sm:$0x1] %vm19_vm1, %v184_v9  ;;  %v51_v12 = vand.u32 127, %v50_v11  ;;  %v86_v27 = vsel %vm70_vm3, %v25_v22, 0.0 }
   0x5   :  { %22 = vst.msk [vmem:[#allocation4] sm:$0x1] %vm19_vm1, %v184_v9  ;;  %s131_s19 = sshll.u32 %s185_s18, 4  ;;  %s132_s19 = int_to_ptr.vmem [resolvable:$true] %s131_s19 }
   0x6   :  { %s159_s20 = scalar_lea.vmem %s132_s19, 16  ;;  %s163_s21 = scalar_lea.vmem %s132_s19, 32 }
   0x7   :  { %p160_p0 = scmp.ne.s32.totalorder %s132_s19, %s159_s20  ;;  %p164_p1 = scmp.lt.s32.totalorder %s132_s19, %s132_s19 }
   0x8   :  { %p165_p2 = scmp.lt.s32.totalorder %s163_s21, %s159_s20 }
   0xa   :  { %p166_p3 = por %p165_p2, %p164_p1 }
   0xb   :  { %v67_v53 = vld [vmem:[#allocation2] sm:$0x1]  ;;  %v85_v56 = vld [vmem:[#allocation3] sm:$0x1] }
   0xc   :  { %v99_v59 = vld [vmem:[#allocation4] sm:$0x1]  ;;  %p167_p4 = pnand %p166_p3, %p160_p0 }
  0x83   :  { %v54_v13 = vpop.permute.xlu1 %53 }
  0x84   :  { %vm55_vm2 = vcmp.eq.s32.totalorder %v51_v12, %v54_v13 }
  0x85   :  { %v139_v17 = vsel %vm55_vm2, 1.0, %v184_v9 }
  0x90   :  { %v39_v4 = vpop.xlane.xlu0 %38 }
  0x91   :  { %v40_v5 = vsub.f32 %v23_v0, %v39_v4 }
  0x93   :  { %v41_v6 = vmul.f32 1.442695, %v40_v5 }
  0x95   :  { %151 = vpow2.f32 %v41_v6 }
  0x9f   :  { %v152_v7 = vpop.eup %151 }
  0xa0   :  { %v43_v8 = vsel %vm36_vm0, %v152_v7, 0.0 }
  0xa1   :  { %44 = vadd.xlane.f32.xlu0 %v43_v8 }
 0x12e   :  { %v45_v10 = vpop.xlane.xlu0 %44 }
 0x12f   :  { %153 = vlog2.f32 %v45_v10 }
 0x139   :  { %v154_v14 = vpop.eup %153 }
 0x13a   :  { %v47_v15 = vmul.f32 0.6931472, %v154_v14 }
 0x13c   :  { %v48_v16 = vadd.f32 %v47_v15, %v39_v4 }
 0x13e   :  { %v49_v18 = vsub.f32 %v23_v0, %v48_v16 }
 0x140   :  { %v58_v19 = vmul.f32 %v139_v17, %v49_v18 }
 0x142   :  { %v59_v20 = vsel %vm36_vm0, %v58_v19, 0.0 }
 0x143   :  { %60 = vadd.xlane.f32.xlu1 %v59_v20 }
 0x1d0   :  { %v61_v21 = vpop.xlane.xlu1 %60 }
 0x1d1   :  { %v62_v23 = vmul.f32 1.442695, %v61_v21  ;;  %v68_v24 = vsub.f32 0.0, %v61_v21 }
 0x1d3   :  { %155 = vpow2.f32 %v62_v23  ;;  %v69_v25 = vmul.f32 %v68_v24, %v25_v22 }
 0x1d5   :  { %v71_v26 = vsel %vm70_vm3, %v69_v25, 0.0 }
 0x1d6   :  { %72 = vadd.xlane.f32.xlu0 %v71_v26 }
 0x1da   :  { %87 = vadd.xlane.f32.xlu0 %v86_v27 }
 0x1dd   :  { %v156_v28 = vpop.eup %155 }
 0x1de   :  { %v64_v29 = vsub.f32 1.0, %v156_v28 }
 0x1e0   :  { %v65_v30 = vmul.f32 %v64_v29, %v64_v29 }
 0x1e2   :  { %v100_v31 = vsel %vm70_vm3, %v65_v30, 0.0 }
 0x1e3   :  { %101 = vadd.xlane.f32.xlu0 %v100_v31 }
 0x263   :  { %v73_v32 = vpop.xlane.xlu0 %72 }
 0x264   :  { %v74_v33 = vrot.slane %v73_v32, 4 }
 0x266   :  { %v75_v34 = vadd.f32 %v74_v33, %v73_v32 }
 0x267   :  { %v88_v35 = vpop.xlane.xlu0 %87 }
 0x268   :  { %v76_v36 = vrot.slane %v75_v34, 2  ;;  %v89_v37 = vrot.slane %v88_v35, 4 }
 0x26a   :  { %v90_v38 = vadd.f32 %v89_v37, %v88_v35  ;;  %v77_v39 = vadd.f32 %v76_v36, %v75_v34 }
 0x26c   :  { %v91_v40 = vrot.slane %v90_v38, 2  ;;  %v78_v41 = vrot.slane %v77_v39, 1 }
 0x26e   :  { %v79_v42 = vadd.f32 %v78_v41, %v77_v39  ;;  %v92_v43 = vadd.f32 %v91_v40, %v90_v38 }
 0x270   :  { %140 = vpush %v79_v42  ;;  %v102_v44 = vpop.xlane.xlu0 %101  ;;  %v93_v45 = vrot.slane %v92_v43, 1 }
 0x271   :  { %v103_v46 = vrot.slane %v102_v44, 4 }
 0x272   :  { %v94_v47 = vadd.f32 %v93_v45, %v92_v43 }
 0x273   :  { %v104_v48 = vadd.f32 %v103_v46, %v102_v44 }
 0x274   :  { %142 = vpush %v94_v47 }
 0x275   :  { %v105_v49 = vrot.slane %v104_v48, 2 }
 0x277   :  { %v106_v50 = vadd.f32 %v105_v49, %v104_v48 }
 0x279   :  { %v107_v51 = vrot.slane %v106_v50, 1 }
 0x27b   :  { %v108_v52 = vadd.f32 %v107_v51, %v106_v50 }
 0x27d   :  { %144 = vpush %v108_v52 }
 0x2a1   :  { %s141_s2 = spop %140 }
 0x2a2   :  { %v81_v54 = vstv %s141_s2 }
 0x2a3   :  { %v82_v55 = vadd.f32 %v81_v54, %v67_v53 }
 0x2a5   :  { %84 = vst.msk [vmem:[#allocation2] sm:$0x1] %vm19_vm1, %v82_v55  ;;  %s143_s16 = spop %142 }
 0x2a6   :  { %v96_v57 = vstv %s143_s16 }
 0x2a7   :  { %v97_v58 = vadd.f32 %v96_v57, %v85_v56 }
 0x2a9   :  { %98 = vst.msk [vmem:[#allocation3] sm:$0x1] %vm19_vm1, %v97_v58 }
 0x2ac   :  { %v116_v1 = vld [vmem:[#allocation2] sm:$0x1] }
 0x2ae   :  { %s145_s17 = spop %144 }
 0x2af   :  { %v110_v60 = vstv %s145_s17 }
 0x2b0   :  { %v111_v61 = vadd.f32 %v110_v60, %v99_v59  ;;  %v117_v62 = vld [vmem:[#allocation3] sm:$0x1] }
 0x2b1   :  { %157 = vrcp.f32 %v117_v62 }
 0x2b2   :  { %112 = vst.msk [vmem:[#allocation4] sm:$0x1] %vm19_vm1, %v111_v61 }
 0x2b9   :  { %v120_v63 = vld [vmem:[#allocation4] sm:$0x1] }
 0x2ba   :  { %v122_v3 = vmul.f32 0.125, %v120_v63 }
 0x2bb   :  { %v158_v0 = vpop.eup %157 }
 0x2bc   :  { %v119_v2 = vmul.f32 %v158_v0, %v116_v1 }
 0x2be   :  { %v123_v4 = vmul.f32 %v122_v3, %v119_v2 }
 0x2c0   :  { %124 = vst.msk [vmem:[#allocation5] sm:$0x1] %vm19_vm1, %v123_v4 }
 0x2c1   :  { %170 = shalt.err (!%p167_p4)
}
 0x2c2   :  { %s171_s24 = scalar_lea.hbm %s240_s3, 16 }
 0x2c3   :  { %p172_p5 = scmp.ne.s32.totalorder %s240_s3, %s171_s24  ;;  %p175_p6 = scmp.lt.u32.totalorder %s171_s24, %s240_s3 }
 0x2c5   :  { %p177_p7 = pnand %p175_p6, %p172_p5 }
 0x2c7   :  { %180 = shalt.err (!%p177_p7)
}
 0x2c8   :  { %134 = dma.vmem_to_hbm [thread:$0]  %s132_s19, 16, %s240_s3, [#allocation6]  }
 0x2c9   :  { %181 = dma.done.wait [#allocation6], 16  }
 0x2ca   :  { %182 = vsyncadd [#allocation6], 4294967280 }
 0x2cb   :  { %138 = vsyncpa [#allocation6], 1 }

</bundles_post_ra>
